<compile_context>
chip_gen: v7x
topology: tpu7x:2x2x1
jax: 0.10.0
libtpu: 0.0.40
codegen_flags: <defaults>
</compile_context>

<pallas_src>
import functools

import jax
import jax.numpy as jnp
from jax import lax
from jax.experimental import pallas as pl
from jax.experimental.pallas import tpu as pltpu


def _round_up(a: int, b: int) -> int:
    return ((a + b - 1) // b) * b


def _ffn_kernel(x_ref, w1_ref, b1_ref, w2_ref, b2_ref, gamma_ref, beta_ref,
                o_ref, *, d_valid: int, d_pad: int, hid_chunk: int, n_chunks: int):
    # x_ref: (TM, d_in_p) compute dtype; w1_ref: (d_in_p, d_hid_p); w2_ref: (d_hid_p, d_in_p)
    x = x_ref[...]
    x_f32 = x.astype(jnp.float32)
    tm = x.shape[0]
    d_in_p = o_ref.shape[-1]

    def chunk(start):
        # One slice of the hidden dimension: (TM, chunk) f32 intermediate only.
        w1c = w1_ref[:, pl.ds(start, hid_chunk)]
        b1c = b1_ref[:, pl.ds(start, hid_chunk)]
        w2c = w2_ref[pl.ds(start, hid_chunk), :]
        h = jnp.dot(x, w1c, preferred_element_type=jnp.float32)
        h = jnp.maximum(h + b1c.astype(jnp.float32), 0.0)
        return jnp.dot(h.astype(w2c.dtype), w2c, preferred_element_type=jnp.float32)

    if n_chunks == 1:
        y = chunk(0)
    else:
        def body(k, acc):
            start = pl.multiple_of(k * hid_chunk, hid_chunk)
            return acc + chunk(start)
        y = lax.fori_loop(0, n_chunks, body,
                          jnp.zeros((tm, d_in_p), jnp.float32))

    y = y + b2_ref[...].astype(jnp.float32)

    # Residual + LayerNorm over the REAL d_in.  Padded columns of z are exactly 0
    # (zero-padded x / W2-cols / b2), so the mean sum over the padded axis is exact.
    z = y + x_f32
    inv_d = 1.0 / float(d_valid)
    mean = jnp.sum(z, axis=-1, keepdims=True) * inv_d
    zc = z - mean
    if d_pad:
        # Two-pass variance: mask the padded columns (they became -mean above).
        col = lax.broadcasted_iota(jnp.int32, zc.shape, 1)
        zc = jnp.where(col < d_valid, zc, 0.0)
    var = jnp.sum(zc * zc, axis=-1, keepdims=True) * inv_d
    zn = zc * lax.rsqrt(var + 1e-5)

    out = zn * gamma_ref[...].astype(jnp.float32) + beta_ref[...].astype(jnp.float32)
    o_ref[...] = out.astype(o_ref.dtype)


def positionwise_feed_forward(x, w1, b1, w2, b2, gamma, beta,
                              *, compute_dtype=jnp.bfloat16):
    """x: (B, L, d_in). w1: (d_in, d_hid), w2: (d_hid, d_in). Returns (B, L, d_in)."""
    B, L, d_in = x.shape
    d_hid = w1.shape[1]
    N = B * L
    out_dtype = x.dtype

    # ---- lane-dense feature padding (multiples of 128), only when needed ----
    d_in_p = _round_up(d_in, 128)
    d_hid_p = _round_up(d_hid, 128)
    d_pad = d_in_p - d_in
    h_pad = d_hid_p - d_hid

    # ---- row tiling: balanced tiles, >= 2 grid steps (both v7x TCs) when possible ----
    target = 512
    if N <= 8:
        TM = N  # single partial tile; block dim == full array dim is allowed
    else:
        n_tiles = max(2, pl.cdiv(N, target))
        TM = _round_up(pl.cdiv(N, n_tiles), 8)
    grid = pl.cdiv(N, TM)

    # ---- hidden-dim chunking so the (TM, chunk) f32 intermediate stays ~<= 4 MiB ----
    h_budget = 4 * 2**20
    cap = max(128, (h_budget // (max(TM, 8) * 4)) // 128 * 128)
    hid_chunk = d_hid_p
    if d_hid_p > cap:
        m = d_hid_p // 128
        best = 1
        for div in range(1, m + 1):
            if m % div == 0 and div * 128 <= cap:
                best = div
        hid_chunk = best * 128
    n_chunks = d_hid_p // hid_chunk

    # ---- wrapper-side casts; no row padding (partial last block handled by Pallas) ----
    x2d = x.reshape(N, d_in).astype(compute_dtype)
    if d_pad:
        x2d = jnp.pad(x2d, ((0, 0), (0, d_pad)))
    w1_p = w1.astype(compute_dtype)
    w2_p = w2.astype(compute_dtype)
    if d_pad or h_pad:
        w1_p = jnp.pad(w1_p, ((0, d_pad), (0, h_pad)))
        w2_p = jnp.pad(w2_p, ((0, h_pad), (0, d_pad)))
    b1_p = jnp.pad(b1.astype(jnp.float32).reshape(1, d_hid), ((0, 0), (0, h_pad)))
    b2_p = jnp.pad(b2.astype(jnp.float32).reshape(1, d_in), ((0, 0), (0, d_pad)))
    gamma_p = jnp.pad(gamma.astype(jnp.float32).reshape(1, d_in), ((0, 0), (0, d_pad)))
    beta_p = jnp.pad(beta.astype(jnp.float32).reshape(1, d_in), ((0, 0), (0, d_pad)))

    # ---- VMEM budget: single-buffered resident weights + double-buffered x/out tiles
    #      + f32 intermediates; 1.5x headroom ----
    comp_isz = jnp.dtype(compute_dtype).itemsize
    out_isz = jnp.dtype(out_dtype).itemsize
    weight_bytes = 2 * d_in_p * d_hid_p * comp_isz
    param_bytes = (d_hid_p + 3 * d_in_p) * 4
    stream_bytes = 2 * TM * d_in_p * (comp_isz + out_isz)
    interm_bytes = TM * hid_chunk * (4 + comp_isz) + 3 * TM * d_in_p * 4
    est = weight_bytes + param_bytes + stream_bytes + interm_bytes
    vmem_limit = int(min(max(32 * 2**20, est * 1.5), 120 * 2**20))

    cost = pl.CostEstimate(
        flops=4 * N * d_in_p * d_hid_p,          # two matmuls, 2*M*K*N each
        transcendentals=N,                       # one rsqrt per row
        bytes_accessed=(N * d_in_p * comp_isz    # x stream in
                        + N * d_in_p * out_isz   # out stream
                        + weight_bytes + param_bytes),
    )

    def _resident_spec(shape):
        # Constant index_map -> fetched once; single-buffer to halve resident VMEM.
        idx = lambda i: (0,) * len(shape)
        try:
            return pl.BlockSpec(shape, idx, pipeline_mode=pl.Buffered(1))
        except (TypeError, AttributeError):
            return pl.BlockSpec(shape, idx)

    kernel = functools.partial(_ffn_kernel, d_valid=d_in, d_pad=d_pad,
                               hid_chunk=hid_chunk, n_chunks=n_chunks)

    out2d = pl.pallas_call(
        kernel,
        out_shape=jax.ShapeDtypeStruct((N, d_in_p), out_dtype),
        grid=(grid,),
        in_specs=[
            pl.BlockSpec((TM, d_in_p), lambda i: (i, 0)),   # x tile (streams)
            _resident_spec((d_in_p, d_hid_p)),              # w1 (resident)
            _resident_spec((1, d_hid_p)),                   # b1
            _resident_spec((d_hid_p, d_in_p)),              # w2 (resident)
            _resident_spec((1, d_in_p)),                    # b2
            _resident_spec((1, d_in_p)),                    # gamma
            _resident_spec((1, d_in_p)),                    # beta
        ],
        out_specs=pl.BlockSpec((TM, d_in_p), lambda i: (i, 0)),
        compiler_params=pltpu.CompilerParams(
            dimension_semantics=("parallel",),              # row tiles independent
            vmem_limit_bytes=vmem_limit),
        cost_estimate=cost,
    )(x2d, w1_p, b1_p, w2_p, b2_p, gamma_p, beta_p)

    if d_pad:
        out2d = out2d[:, :d_in]
    return out2d.reshape(B, L, d_in)


if __name__ == "__main__":
    # Small shapes consistent with the module's forward: x is (batch, seq, d_in)
    B, L, d_in, d_hid = 2, 8, 32, 64

    key = jax.random.PRNGKey(0)
    kx, kw1, kb1, kw2, kb2 = jax.random.split(key, 5)

    x = jax.random.normal(kx, (B, L, d_in), dtype=jnp.float32)

    # Conv1d weight (out, in, 1) stored transposed as (in, out) so the kernel
    # can do x @ W directly.
    w1 = jax.random.normal(kw1, (d_in, d_hid), dtype=jnp.float32) * 0.05
    b1 = jax.random.normal(kb1, (d_hid,), dtype=jnp.float32) * 0.05
    w2 = jax.random.normal(kw2, (d_hid, d_in), dtype=jnp.float32) * 0.05
    b2 = jax.random.normal(kb2, (d_in,), dtype=jnp.float32) * 0.05
    gamma = jnp.ones((d_in,), dtype=jnp.float32)   # LayerNorm weight
    beta = jnp.zeros((d_in,), dtype=jnp.float32)   # LayerNorm bias

    # Pure-JAX reference of the same semantics (dropout is identity at eval).
    def ref(xv):
        h = jnp.maximum(jnp.einsum("bld,dh->blh", xv, w1) + b1, 0.0)
        y = jnp.einsum("blh,hd->bld", h, w2) + b2
        z = y + xv
        mu = jnp.mean(z, axis=-1, keepdims=True)
        var = jnp.mean((z - mu) ** 2, axis=-1, keepdims=True)
        return (z - mu) * jax.lax.rsqrt(var + 1e-5) * gamma + beta

    expected = ref(x)

    # Exact f32 datapath.
    out_f32 = positionwise_feed_forward(x, w1, b1, w2, b2, gamma, beta,
                                        compute_dtype=jnp.float32)
    jax.block_until_ready(out_f32)
    assert out_f32.shape == (B, L, d_in) and out_f32.dtype == x.dtype
    assert jnp.allclose(out_f32, expected, atol=1e-4, rtol=1e-4)

    # Default bf16-MXU datapath (f32 accumulation / LayerNorm), looser tolerance.
    out_bf16 = positionwise_feed_forward(x, w1, b1, w2, b2, gamma, beta)
    jax.block_until_ready(out_bf16)
    assert jnp.allclose(out_bf16, expected, atol=3e-2, rtol=3e-2)

    print("KERNEL_OK")
</pallas_src>

<mosaic_0001>
module attributes {stable_mosaic.version = 11 : i64} {
  func.func @_ffn_kernel(%arg0: i32, %arg1: memref<8x128xf32, #tpu.memory_space<vmem>>, %arg2: memref<128x128xf32, #tpu.memory_space<vmem>>, %arg3: memref<1x128xf32, #tpu.memory_space<vmem>>, %arg4: memref<128x128xf32, #tpu.memory_space<vmem>>, %arg5: memref<1x128xf32, #tpu.memory_space<vmem>>, %arg6: memref<1x128xf32, #tpu.memory_space<vmem>>, %arg7: memref<1x128xf32, #tpu.memory_space<vmem>>, %arg8: memref<8x128xf32, #tpu.memory_space<vmem>>) attributes {dimension_semantics = [#tpu.dimension_semantics<parallel>], iteration_bounds = array<i64: 2>, scalar_prefetch = 0 : i64, scratch_operands = 0 : i64, tpu.core_type = #tpu.core_type<tc>, window_params = [{transform_indices = @transform_0, window_bounds = array<i64: 8, 128>}, {pipeline_mode = #tpu.pipeline_mode<synchronous>, transform_indices = @transform_1, window_bounds = array<i64: 128, 128>}, {pipeline_mode = #tpu.pipeline_mode<synchronous>, transform_indices = @transform_2, window_bounds = array<i64: 1, 128>}, {pipeline_mode = #tpu.pipeline_mode<synchronous>, transform_indices = @transform_3, window_bounds = array<i64: 128, 128>}, {pipeline_mode = #tpu.pipeline_mode<synchronous>, transform_indices = @transform_4, window_bounds = array<i64: 1, 128>}, {pipeline_mode = #tpu.pipeline_mode<synchronous>, transform_indices = @transform_5, window_bounds = array<i64: 1, 128>}, {pipeline_mode = #tpu.pipeline_mode<synchronous>, transform_indices = @transform_6, window_bounds = array<i64: 1, 128>}, {transform_indices = @transform_7, window_bounds = array<i64: 8, 128>}]} {
    %c0 = arith.constant 0 : index
    %c0_0 = arith.constant 0 : index
    %0 = vector.load %arg1[%c0, %c0_0] : memref<8x128xf32, #tpu.memory_space<vmem>>, vector<8x128xf32>
    %c0_1 = arith.constant 0 : index
    %c0_2 = arith.constant 0 : index
    %1 = vector.load %arg2[%c0_1, %c0_2] : memref<128x128xf32, #tpu.memory_space<vmem>>, vector<128x128xf32>
    %c0_3 = arith.constant 0 : index
    %c0_4 = arith.constant 0 : index
    %2 = vector.load %arg3[%c0_3, %c0_4] : memref<1x128xf32, #tpu.memory_space<vmem>>, vector<1x128xf32>
    %c0_5 = arith.constant 0 : index
    %c0_6 = arith.constant 0 : index
    %3 = vector.load %arg4[%c0_5, %c0_6] : memref<128x128xf32, #tpu.memory_space<vmem>>, vector<128x128xf32>
    %cst = arith.constant dense<0.000000e+00> : vector<8x128xf32>
    %4 = tpu.matmul %0, %1, %cst {dimension_numbers = #tpu.dot_dimension_numbers<[1], [0], [0], [1], [0, 0, 1, 1], [], []>} : vector<8x128xf32>, vector<128x128xf32>, vector<8x128xf32> -> vector<8x128xf32>
    %5 = vector.broadcast %2 : vector<1x128xf32> to vector<8x128xf32>
    %6 = arith.addf %4, %5 : vector<8x128xf32>
    %cst_7 = arith.constant 0.000000e+00 : f32
    %7 = vector.broadcast %cst_7 : f32 to vector<8x128xf32>
    %8 = arith.maximumf %6, %7 : vector<8x128xf32>
    %cst_8 = arith.constant dense<0.000000e+00> : vector<8x128xf32>
    %9 = tpu.matmul %8, %3, %cst_8 {dimension_numbers = #tpu.dot_dimension_numbers<[1], [0], [0], [1], [0, 0, 1, 1], [], []>} : vector<8x128xf32>, vector<128x128xf32>, vector<8x128xf32> -> vector<8x128xf32>
    %c0_9 = arith.constant 0 : index
    %c0_10 = arith.constant 0 : index
    %10 = vector.load %arg5[%c0_9, %c0_10] : memref<1x128xf32, #tpu.memory_space<vmem>>, vector<1x128xf32>
    %11 = vector.broadcast %10 : vector<1x128xf32> to vector<8x128xf32>
    %12 = arith.addf %9, %11 : vector<8x128xf32>
    %13 = arith.addf %12, %0 : vector<8x128xf32>
    %cst_11 = arith.constant dense<0.000000e+00> : vector<8xf32>
    %14 = vector.multi_reduction <add>, %13, %cst_11 [1] : vector<8x128xf32> to vector<8xf32>
    %15 = vector.shape_cast %14 : vector<8xf32> to vector<8x1xf32>
    %cst_12 = arith.constant 3.125000e-02 : f32
    %16 = vector.broadcast %cst_12 : f32 to vector<8x1xf32>
    %17 = arith.mulf %15, %16 : vector<8x1xf32>
    %18 = vector.broadcast %17 : vector<8x1xf32> to vector<8x128xf32>
    %19 = arith.subf %13, %18 : vector<8x128xf32>
    %20 = tpu.iota {dimensions = array<i32: 1>} : vector<8x128xi32>
    %c32_i32 = arith.constant 32 : i32
    %21 = vector.broadcast %c32_i32 : i32 to vector<8x128xi32>
    %22 = arith.cmpi slt, %20, %21 : vector<8x128xi32>
    %cst_13 = arith.constant 0.000000e+00 : f32
    %23 = vector.broadcast %cst_13 : f32 to vector<8x128xf32>
    %24 = arith.select %22, %19, %23 : vector<8x128xi1>, vector<8x128xf32>
    %25 = arith.mulf %24, %24 : vector<8x128xf32>
    %cst_14 = arith.constant dense<0.000000e+00> : vector<8xf32>
    %26 = vector.multi_reduction <add>, %25, %cst_14 [1] : vector<8x128xf32> to vector<8xf32>
    %27 = vector.shape_cast %26 : vector<8xf32> to vector<8x1xf32>
    %cst_15 = arith.constant 3.125000e-02 : f32
    %28 = vector.broadcast %cst_15 : f32 to vector<8x1xf32>
    %29 = arith.mulf %27, %28 : vector<8x1xf32>
    %cst_16 = arith.constant 9.99999974E-6 : f32
    %30 = vector.broadcast %cst_16 : f32 to vector<8x1xf32>
    %31 = arith.addf %29, %30 : vector<8x1xf32>
    %32 = math.rsqrt %31 : vector<8x1xf32>
    %33 = vector.broadcast %32 : vector<8x1xf32> to vector<8x128xf32>
    %34 = arith.mulf %24, %33 : vector<8x128xf32>
    %c0_17 = arith.constant 0 : index
    %c0_18 = arith.constant 0 : index
    %35 = vector.load %arg6[%c0_17, %c0_18] : memref<1x128xf32, #tpu.memory_space<vmem>>, vector<1x128xf32>
    %36 = vector.broadcast %35 : vector<1x128xf32> to vector<8x128xf32>
    %37 = arith.mulf %34, %36 : vector<8x128xf32>
    %c0_19 = arith.constant 0 : index
    %c0_20 = arith.constant 0 : index
    %38 = vector.load %arg7[%c0_19, %c0_20] : memref<1x128xf32, #tpu.memory_space<vmem>>, vector<1x128xf32>
    %39 = vector.broadcast %38 : vector<1x128xf32> to vector<8x128xf32>
    %40 = arith.addf %37, %39 : vector<8x128xf32>
    %c0_21 = arith.constant 0 : index
    %c0_22 = arith.constant 0 : index
    %41 = vector.load %arg8[%c0_21, %c0_22] : memref<8x128xf32, #tpu.memory_space<vmem>>, vector<8x128xf32>
    tpu.vector_store %arg8[%c0_21, %c0_22], %40 {strides = array<i32>} : memref<8x128xf32, #tpu.memory_space<vmem>>, vector<8x128xf32>,
    return
  }
  func.func @transform_0(%arg0: i32) -> (i32, i32) {
    %c0_i32 = arith.constant 0 : i32
    %c0_i32_0 = arith.constant 0 : i32
    return %arg0, %c0_i32 : i32, i32
  }
  func.func @transform_1(%arg0: i32) -> (i32, i32) {
    %c0_i32 = arith.constant 0 : i32
    %c0_i32_0 = arith.constant 0 : i32
    %c0_i32_1 = arith.constant 0 : i32
    return %c0_i32, %c0_i32_0 : i32, i32
  }
  func.func @transform_2(%arg0: i32) -> (i32, i32) {
    %c0_i32 = arith.constant 0 : i32
    %c0_i32_0 = arith.constant 0 : i32
    %c0_i32_1 = arith.constant 0 : i32
    return %c0_i32, %c0_i32_0 : i32, i32
  }
  func.func @transform_3(%arg0: i32) -> (i32, i32) {
    %c0_i32 = arith.constant 0 : i32
    %c0_i32_0 = arith.constant 0 : i32
    %c0_i32_1 = arith.constant 0 : i32
    return %c0_i32, %c0_i32_0 : i32, i32
  }
  func.func @transform_4(%arg0: i32) -> (i32, i32) {
    %c0_i32 = arith.constant 0 : i32
    %c0_i32_0 = arith.constant 0 : i32
    %c0_i32_1 = arith.constant 0 : i32
    return %c0_i32, %c0_i32_0 : i32, i32
  }
  func.func @transform_5(%arg0: i32) -> (i32, i32) {
    %c0_i32 = arith.constant 0 : i32
    %c0_i32_0 = arith.constant 0 : i32
    %c0_i32_1 = arith.constant 0 : i32
    return %c0_i32, %c0_i32_0 : i32, i32
  }
  func.func @transform_6(%arg0: i32) -> (i32, i32) {
    %c0_i32 = arith.constant 0 : i32
    %c0_i32_0 = arith.constant 0 : i32
    %c0_i32_1 = arith.constant 0 : i32
    return %c0_i32, %c0_i32_0 : i32, i32
  }
  func.func @transform_7(%arg0: i32) -> (i32, i32) {
    %c0_i32 = arith.constant 0 : i32
    %c0_i32_0 = arith.constant 0 : i32
    return %arg0, %c0_i32 : i32, i32
  }
}

</mosaic_0001>

<bundles_post_ra>
// kernel: tpu_custom_call.1
= control target key start
LH: loop header
LB: loop body
LE: loop exit
PB: predicated region body
PF: predicated region fallthrough
CT: control target
= control target key end

     0   :  { %12 = vsyncpa [#allocation3], 0  ;;  %s1364_s0 = inlined_call_operand.hbm [shape: f32[16,128], index: 0, kind: input, shape index: {}]   ;;  %s1365_s1 = inlined_call_operand.hbm [shape: f32[128,128], index: 1, kind: input, shape index: {}]   ;;  %s1366_s2 = inlined_call_operand.vmem [shape: f32[1,128], index: 2, kind: input, shape index: {}]   ;;  %s1367_s3 = inlined_call_operand.hbm [shape: f32[128,128], index: 3, kind: input, shape index: {}]   ;;  %s1368_s4 = inlined_call_operand.vmem [shape: f32[1,128], index: 4, kind: input, shape index: {}]   ;;  %s1369_s5 = inlined_call_operand.vmem [shape: f32[1,128], index: 5, kind: input, shape index: {}]   ;;  %s1370_s6 = inlined_call_operand.vmem [shape: f32[1,128], index: 6, kind: input, shape index: {}]   ;;  %s1371_s7 = inlined_call_operand.hbm [shape: f32[16,128], index: 7, kind: output, shape index: {}]  }
   0x1   :  { %14 = vsyncpa [#allocation3 + $0x1], 0 }
   0x2   :  { %15 = vsyncpa [#allocation6], 0 }
   0x3   :  { %16 = vsyncpa [#allocation4], 0 }
   0x4   :  { %18 = vsyncpa [#allocation4 + $0x1], 0  ;;  %s1100_s24 = smov 0   ;;  %s1102_s25 = smov 0  }
   0x5   :  { %s1104_s26 = smov 0   ;;  %s1106_s27 = smov 0  }
   0x6 LB: > { %s1121_s28 = sadd.s32 4294967295, %s1049_s27   ;;  %s647_s29 = sadd.s32 4294967294, %s1049_s27   ;;  %s1049_s27 = sphi %s1106_s27, %s1391_s27   ;;  %s1045_s26 = sphi %s1104_s26, %s1390_s26   ;;  %s1041_s25 = sphi %s1102_s25, %s1389_s25   ;;  %s1037_s24 = sphi %s1100_s24, %s1388_s24  }
   0x7   : > { %p44_p0 = scmp.ne.s32.totalorder %s1041_s25, %s1037_s24  ;;  %p1372_p1 = scmp.eq.s32.totalorder %s1121_s28, 0 }
   0x8   : > { %p200_p3 = scmp.eq.s32.totalorder %s647_s29, 1  ;;  %p648_p5 = scmp.ge.s32.totalorder %s1049_s27, 1 }
   0x9   : > { %p1130_p4 = por %p1372_p1, %p44_p0  ;;  %p207_p7 = scmp.lt.s32.totalorder %s1049_s27, 3 }
   0xa   : > { %p1135_p6 = por %p200_p3, %p44_p0  ;;  %s1051_s10 = smov [#allocation5]  }
   0xb   : > { %s1375_s30 = scalar_select %p1130_p4, 1, 0 }
   0xc   : > { %s1376_s8 = scalar_select %p1135_p6, 1, 0 }
   0xd   : > { %p1140_p8 = pnand %p648_p5, %p207_p7  ;;  %s219_s11 = sshll.u32 %s1051_s10, 4  ;;  %s1144_s11 = int_to_ptr.vmem [resolvable:$true] %s219_s11 }
   0xe   : > { %s1052_s13 = smov [#allocation7]   ;;  %s893_s17 = scalar_lea.hbm %s1365_s1, 2048 }
   0xf   : > { %p831_p9 = pneg %p1140_p8  ;;  %s235_s14 = sshll.u32 %s1052_s13, 4  ;;  %s1155_s14 = int_to_ptr.vmem [resolvable:$true] %s235_s14 }
  0x10   : > { %p894_p12 = scmp.ne.s32.totalorder %s1365_s1, %s893_s17  ;;  %p900_p5 = scmp.lt.u32.totalorder %s893_s17, %s1365_s1 }
  0x11   : > { %p1151_p11 = pnand %p831_p9, %p1372_p1 }
  0x13   : > { %p895_p13 = pneg %p1151_p11 }
  0x15   : > { %p896_p0 = pnand %p895_p13, %p894_p12 }
  0x17   : > { %p897_p3 = pneg %p896_p0 }
  0x19   : > { %p902_p7 = pnand %p900_p5, %p897_p3 }
  0x1b   : > { %905 = shalt.err (!%p902_p7)
}
  0x1c   : > { %s906_s22 = scalar_lea.vmem %s1144_s11, 2048  ;;  %p914_p2 = scmp.lt.s32.totalorder %s1144_s11, %s1144_s11 }
  0x1d   : > { %p907_p9 = scmp.ne.s32.totalorder %s1144_s11, %s906_s22  ;;  %p915_p12 = scmp.lt.s32.totalorder %s906_s22, %s906_s22 }
  0x1f   : > { %p909_p10 = pnand %p907_p9, %p895_p13  ;;  %p916_p0 = por %p915_p12, %p914_p2 }
  0x21   : > { %p910_p1 = pneg %p909_p10 }
  0x23   : > { %p917_p6 = pnand %p916_p0, %p910_p1 }
  0x25   : > { %920 = shalt.err (!%p917_p6)
}
  0x26   : > { %s1053_s23 = smov 128   ;;  %s1054_s29 = smov 8  }
  0x27   : > { %834 = dma.hbm_to_vmem [thread:$0]  (!%p1151_p11), %s1365_s1, 2048, %s1144_s11, [#allocation6], %s1053_s23, %s1053_s23, %s1054_s29  }
  0x28   : > { %s921_s17 = scalar_lea.hbm %s1367_s3, 2048 }
  0x29   : > { %p922_p2 = scmp.ne.s32.totalorder %s1367_s3, %s921_s17  ;;  %p928_p10 = scmp.lt.u32.totalorder %s921_s17, %s1367_s3 }
  0x2b   : > { %p924_p1 = pnand %p922_p2, %p895_p13 }
  0x2d   : > { %p925_p6 = pneg %p924_p1 }
  0x2f   : > { %p930_p3 = pnand %p928_p10, %p925_p6 }
  0x31   : > { %933 = shalt.err (!%p930_p3)
}
  0x32   : > { %s934_s11 = scalar_lea.vmem %s1155_s14, 2048  ;;  %p942_p12 = scmp.lt.s32.totalorder %s1155_s14, %s1155_s14 }
  0x33   : > { %p935_p5 = scmp.ne.s32.totalorder %s1155_s14, %s934_s11  ;;  %p943_p0 = scmp.lt.s32.totalorder %s934_s11, %s934_s11 }
  0x35   : > { %p937_p7 = pnand %p935_p5, %p895_p13  ;;  %p944_p2 = por %p943_p0, %p942_p12 }
  0x37   : > { %p938_p9 = pneg %p937_p7 }
  0x39   : > { %p945_p1 = pnand %p944_p2, %p938_p9 }
  0x3b   : > { %948 = shalt.err (!%p945_p1)
}
  0x3c   : > { %837 = dma.hbm_to_vmem [thread:$0]  (!%p1151_p11), %s1367_s3, 2048, %s1155_s14, [#allocation6], %s1053_s23, %s1053_s23, %s1054_s29  }
  0x3d   : > { %s1210_s13 = sadd.s32 1, %s1049_s27   ;;  %s31_s12 = sadd.s32 1, %s1045_s26 }
  0x3e   : > { %s28_s15 = ssub.s32 %s1049_s27, %s1210_s13  ;;  %p38_p13 = scmp.ne.s32.totalorder %s1045_s26, %s1041_s25 }
  0x3f   : > { %p29_p6 = scmp.eq.s32.totalorder %s28_s15, 0  ;;  %p39_p10 = scmp.eq.s32.totalorder %s1049_s27, 0 }
  0x40   : > { %p1379_p3 = scmp.eq.s32.totalorder %s1121_s28, 1  ;;  %p848_p7 = scmp.lt.s32.totalorder %s1049_s27, 2 }
  0x41   : > { %s1226_s17 = scalar_select %p29_p6, %s1045_s26, %s31_s12  }
  0x42   : > { %p1220_p5 = por %p1379_p3, %p38_p13  ;;  %p40_p9 = por %p39_p10, %p38_p13 }
  0x43   : > { %s258_s18 = sand.u32 1, %s1045_s26   ;;  %s653_s14 = sshll.u32 %s1049_s27, 7 }
  0x44   : > { %s1380_s16 = scalar_select %p1220_p5, 1, 0 }
  0x45   : > { %s652_s19 = sshll.u32 %s258_s18, 3  ;;  %s1233_s20 = scalar_lea.hbm %s1364_s0, %s653_s14 }
  0x46   : > { %s262_s21 = scalar_lea.vmem [#allocation2], %s652_s19  ;;  %p1237_p11 = pnand %p848_p7, %p40_p9 }
  0x47   : > { %s269_s11 = sshll.u32 %s262_s21, 4  ;;  %s259_s10 = scalar_lea.sflag [#allocation3], %s258_s18  ;;  %s1235_s11 = int_to_ptr.vmem [resolvable:$true] %s269_s11 }
  0x48   : > { %s949_s12 = scalar_lea.hbm %s1233_s20, 128  ;;  %p951_p0 = pneg %p1237_p11 }
  0x49   : > { %p950_p12 = scmp.ne.s32.totalorder %s1233_s20, %s949_s12  ;;  %s954_s14 = scalar_lea.hbm %s1364_s0, 256 }
  0x4a   : > { %p955_p13 = scmp.lt.u32.totalorder %s1233_s20, %s1364_s0  ;;  %p956_p6 = scmp.lt.u32.totalorder %s954_s14, %s949_s12 }
  0x4b   : > { %p952_p2 = pnand %p951_p0, %p950_p12  ;;  %p958_p3 = scmp.lt.u32.totalorder %s949_s12, %s1233_s20 }
  0x4c   : > { %p957_p10 = por %p956_p6, %p955_p13 }
  0x4d   : > { %p953_p1 = pneg %p952_p2 }
  0x4e   : > { %p959_p7 = por %p958_p3, %p957_p10 }
  0x50   : > { %p960_p9 = pnand %p959_p7, %p953_p1 }
  0x52   : > { %963 = shalt.err (!%p960_p9)
}
  0x53   : > { %s964_s18 = scalar_lea.vmem %s1235_s11, 128  ;;  %s1055_s21 = smov [#allocation2]  }
  0x54   : > { %p965_p12 = scmp.ne.s32.totalorder %s1235_s11, %s964_s18  ;;  %s969_s15 = sshll.u32 %s1055_s21, 4  ;;  %s970_s15 = int_to_ptr.vmem [resolvable:$false] %s969_s15 }
  0x55   : > { %s971_s19 = scalar_lea.vmem %s970_s15, 256  ;;  %p972_p4 = scmp.lt.s32.totalorder %s1235_s11, %s970_s15 }
  0x56   : > { %p967_p2 = pnand %p965_p12, %p951_p0  ;;  %p973_p13 = scmp.lt.s32.totalorder %s971_s19, %s964_s18 }
  0x58   : > { %p968_p5 = pneg %p967_p2  ;;  %p974_p6 = por %p973_p13, %p972_p4 }
  0x5a   : > { %p975_p10 = pnand %p974_p6, %p968_p5 }
  0x5c   : > { %978 = shalt.err (!%p975_p10)
}
  0x5d   : > { %841 = dma.hbm_to_vmem [thread:$0]  (!%p1237_p11), %s1233_s20, 128, %s1235_s11, %s259_s10  }
  0x5e   : > { %278 = sbr.rel (%p1140_p8) target bundleno = 897 (0x381), region = 48  ;;  %s1269_s12 = sand.u32 (!%p1140_p8), 1, %s1041_s25  }
  0x5f   : > { %s655_s14 = sshll.u32 (!%p1140_p8), %s1269_s12, 3  ;;  %s281_s23 = scalar_lea.sflag (!%p1140_p8), [#allocation3], %s1269_s12 }
  0x60   : > { %s1275_s29 = scalar_lea.vmem (!%p1140_p8), [#allocation2], %s655_s14  ;;  %p1382_p4 = scmp.ne.s32.totalorder (!%p1140_p8), %s1375_s30, 0 }
  0x65   : > { %1024 = dma.done.wait (%p1382_p4), %s281_s23, 128  }
  0x66   : > { %1026 = vsyncadd (%p1382_p4), %s281_s23, 4294967168  ;;  %p1383_p5 = scmp.eq.s32.totalorder %s1121_s28, 0 }
  0x68   : > { %1028 = dma.done.wait (%p1383_p5), [#allocation6], 4096   ;;  %p1384_p8 = pmov %p1383_p5 }
  0x69   : > { %v1056_v0 = vmov 0.0|0.0   ;;  %vm1057_vm0 = vmmov 0   ;;  %v1058_v1 = vmov 0.0   ;;  %v324_v2 = vld [vmem:[#allocation5] sm:$0xff]  ;;  %v325_v3 = vld [vmem:[#allocation5 + $0x8] sm:$0xff]  ;;  %v326_v4 = vld [vmem:[#allocation5 + $0x10] sm:$0xff]  ;;  %v516_v61 = vlaneseq }
  0x6a   : > { %1030 = vsyncadd (%p1384_p8), [#allocation6], 4294963200  ;;  %771 = vmatprep.subr.bf16.mxu0 %v1056_v0  ;;  %733 = vmatprep.mubr.msk.f32.mxu0 %vm1057_vm0, %v1058_v1  ;;  %v772_v5 = vpack.c.bf16 %v325_v3, %v324_v2  ;;  %v327_v6 = vld [vmem:[#allocation5 + $0x18] sm:$0xff]  ;;  %v328_v8 = vld [vmem:[#allocation5 + $0x20] sm:$0xff]  ;;  %s664_s15 = sshll.u32 %s1121_s28, 7  ;;  %s322_s19 = scalar_lea.vmem [#allocation8], %s655_s14 }
  0x6b   : > { %795 = vmatprep.subr.bf16.mxu1 %v1056_v0  ;;  %768 = vmatprep.mubr.msk.f32.mxu1 %vm1057_vm0, %v1058_v1  ;;  %v775_v7 = vpack.c.bf16 %v327_v6, %v326_v4  ;;  %v329_v9 = vld [vmem:[#allocation5 + $0x28] sm:$0xff]  ;;  %v341_v10 = vld [vmem:[#allocation7] sm:$0xff]  ;;  %v343_v12 = vld [vmem:[#allocation7 + $0x10] sm:$0xff]  ;;  %v517_v62 = vand.u32 127, %v516_v61  ;;  %s558_s23 = sshll.u32 %s322_s19, 4  ;;  %s1320_s9 = scalar_lea.hbm %s1371_s7, %s664_s15  ;;  %s1322_s23 = int_to_ptr.vmem [resolvable:$true] %s558_s23 }
  0x6c   : > { %773 = vmatpush3.bf16.msra.mxu0 %v772_v5  ;;  %v342_v11 = vld [vmem:[#allocation7 + $0x8] sm:$0xff]  ;;  %v344_v13 = vld [vmem:[#allocation7 + $0x18] sm:$0xff]  ;;  %v778_v14 = vpack.c.bf16 %v329_v9, %v328_v8  ;;  %v330_v16 = vld [vmem:[#allocation5 + $0x30] sm:$0xff]  ;;  %s545_s20 = scalar_lea.sflag [#allocation4], %s1269_s12  ;;  %s979_s11 = scalar_lea.vmem %s1322_s23, 128 }
  0x6d   : > { %774 = vmatprep.subr.bf16.mxu0 %v1056_v0  ;;  %v796_v15 = vpack.c.bf16 %v342_v11, %v341_v10  ;;  %v331_v17 = vld [vmem:[#allocation5 + $0x38] sm:$0xff]  ;;  %v799_v18 = vpack.c.bf16 %v344_v13, %v343_v12  ;;  %v345_v19 = vld [vmem:[#allocation7 + $0x20] sm:$0xff]  ;;  %v346_v20 = vld [vmem:[#allocation7 + $0x28] sm:$0xff]  ;;  %vm518_vm1 = vcmp.lt.s32.totalorder %v517_v62, 32  ;;  %p980_p11 = scmp.ne.s32.totalorder %s1322_s23, %s979_s11  ;;  %p1385_p0 = scmp.ne.s32.totalorder %s1380_s16, 0 }
  0x6e   : > { %v781_v21 = vpack.c.bf16 %v331_v17, %v330_v16  ;;  %v332_v22 = vld [vmem:[#allocation5 + $0x40] sm:$0xff]  ;;  %v333_v23 = vld [vmem:[#allocation5 + $0x48] sm:$0xff]  ;;  %v802_v24 = vpack.c.bf16 %v346_v20, %v345_v19  ;;  %v347_v25 = vld [vmem:[#allocation7 + $0x30] sm:$0xff]  ;;  %s1059_s28 = smov [#allocation8]  }
  0x6f   : > { %797 = vmatpush3.bf16.msra.mxu1 %v796_v15  ;;  %v348_v26 = vld [vmem:[#allocation7 + $0x38] sm:$0xff]  ;;  %v784_v27 = vpack.c.bf16 %v333_v23, %v332_v22  ;;  %v334_v28 = vld [vmem:[#allocation5 + $0x50] sm:$0xff]  ;;  %v349_v31 = vld [vmem:[#allocation7 + $0x40] sm:$0xff]  ;;  %p981_p1 = pnand %p980_p11, %p1385_p0  ;;  %s983_s14 = sshll.u32 %s1059_s28, 4  ;;  %s984_s14 = int_to_ptr.vmem [resolvable:$false] %s983_s14 }
  0x70   : > { %776 = vmatpush3.bf16.msra.mxu0 %v775_v7  ;;  %798 = vmatprep.subr.bf16.mxu1 %v1056_v0  ;;  %v335_v29 = vld [vmem:[#allocation5 + $0x58] sm:$0xff]  ;;  %v805_v30 = vpack.c.bf16 %v348_v26, %v347_v25  ;;  %v350_v32 = vld [vmem:[#allocation7 + $0x48] sm:$0xff]  ;;  %v336_v34 = vld [vmem:[#allocation5 + $0x60] sm:$0xff]  ;;  %s985_s22 = scalar_lea.vmem %s984_s14, 256  ;;  %p986_p7 = scmp.lt.s32.totalorder %s1322_s23, %s984_s14 }
  0x71   : > { %777 = vmatprep.subr.bf16.mxu0 %v1056_v0  ;;  %v787_v33 = vpack.c.bf16 %v335_v29, %v334_v28  ;;  %v337_v35 = vld [vmem:[#allocation5 + $0x68] sm:$0xff]  ;;  %v808_v36 = vpack.c.bf16 %v350_v32, %v349_v31  ;;  %v351_v37 = vld [vmem:[#allocation7 + $0x50] sm:$0xff]  ;;  %v352_v38 = vld [vmem:[#allocation7 + $0x58] sm:$0xff]  ;;  %p982_p3 = pneg %p981_p1  ;;  %p987_p9 = scmp.lt.s32.totalorder %s985_s22, %s979_s11 }
  0x72   : > { %v790_v39 = vpack.c.bf16 %v337_v35, %v336_v34  ;;  %v338_v40 = vld [vmem:[#allocation5 + $0x70] sm:$0xff]  ;;  %v339_v41 = vld [vmem:[#allocation5 + $0x78] sm:$0xff]  ;;  %v811_v42 = vpack.c.bf16 %v352_v38, %v351_v37  ;;  %v353_v43 = vld [vmem:[#allocation7 + $0x60] sm:$0xff] }
  0x73   : > { %800 = vmatpush3.bf16.msra.mxu1 %v799_v18  ;;  %v354_v44 = vld [vmem:[#allocation7 + $0x68] sm:$0xff]  ;;  %v793_v45 = vpack.c.bf16 %v339_v41, %v338_v40  ;;  %v323_v47 = vld [vmem:[%s1275_s29] sm:$0xff]  ;;  %p988_p12 = por %p987_p9, %p986_p7 }
  0x74   : > { %779 = vmatpush3.bf16.msra.mxu0 %v778_v14  ;;  %801 = vmatprep.subr.bf16.mxu1 %v1056_v0  ;;  %v814_v46 = vpack.c.bf16 %v354_v44, %v353_v43  ;;  %v355_v48 = vld [vmem:[#allocation7 + $0x70] sm:$0xff]  ;;  %v356_v49 = vld [vmem:[#allocation7 + $0x78] sm:$0xff] }
  0x75   : > { %780 = vmatprep.subr.bf16.mxu0 %v1056_v0  ;;  %v817_v50 = vpack.c.bf16 %v356_v49, %v355_v48  ;;  %v659_v51 = vld [vmem:[%s1366_s2] ss:$0 sm:$0xff]  ;;  %p989_p2 = pnand %p988_p12, %p982_p3 }
  0x76   : > { %v660_v56 = vld [vmem:[%s1368_s4] ss:$0 sm:$0xff] }
  0x77   : > { %803 = vmatpush3.bf16.msra.mxu1 %v802_v24  ;;  %v661_v8 = vld [vmem:[%s1369_s5] ss:$0 sm:$0xff] }
  0x78   : > { %782 = vmatpush3.bf16.msra.mxu0 %v781_v21  ;;  %804 = vmatprep.subr.bf16.mxu1 %v1056_v0  ;;  %v662_v10 = vld [vmem:[%s1370_s6] ss:$0 sm:$0xff] }
  0x79   : > { %783 = vmatprep.subr.bf16.mxu0 %v1056_v0 }
  0x7b   : > { %806 = vmatpush3.bf16.msra.mxu1 %v805_v30 }
  0x7c   : > { %785 = vmatpush3.bf16.msra.mxu0 %v784_v27  ;;  %807 = vmatprep.subr.bf16.mxu1 %v1056_v0 }
  0x7d   : > { %786 = vmatprep.subr.bf16.mxu0 %v1056_v0 }
  0x7f   : > { %809 = vmatpush3.bf16.msra.mxu1 %v808_v36 }
  0x80   : > { %788 = vmatpush3.bf16.msra.mxu0 %v787_v33  ;;  %810 = vmatprep.subr.bf16.mxu1 %v1056_v0 }
  0x81   : > { %789 = vmatprep.subr.bf16.mxu0 %v1056_v0 }
  0x83   : > { %812 = vmatpush3.bf16.msra.mxu1 %v811_v42 }
  0x84   : > { %791 = vmatpush3.bf16.msra.mxu0 %v790_v39  ;;  %813 = vmatprep.subr.bf16.mxu1 %v1056_v0 }
  0x85   : > { %792 = vmatprep.subr.bf16.mxu0 %v1056_v0 }
  0x87   : > { %815 = vmatpush3.bf16.msra.mxu1 %v814_v46 }
  0x88   : > { %794 = vmatpush3.bf16.msra.mxu0 %v793_v45  ;;  %816 = vmatprep.subr.bf16.mxu1 %v1056_v0 }
  0x8b   : > { %734 = vmatmul.mubr.f32.vlgmr.msra.gmra.mrb[0].mxu0 %v323_v47  ;;  %818 = vmatpush3.bf16.msra.mxu1 %v817_v50 }
 0x15e   : > { %v429_v52 = vpop.f32.mrb[0].mxu0 }
 0x15f   : > { %v430_v53 = vadd.f32 %v659_v51, %v429_v52  ;;  %v735_v54 = vpop.f32.mrb[1].mxu0 }
 0x161   : > { %v433_v55 = vmax.f32 %v430_v53, 0.0 }
 0x163   : > { %769 = vmatmul.mubr.f32.vlgmr.msra.gmra.mrb[0].mxu1 %v433_v55 }
 0x236   : > { %v507_v57 = vpop.f32.mrb[0].mxu1 }
 0x237   : > { %v508_v58 = vadd.f32 %v660_v56, %v507_v57  ;;  %v770_v59 = vpop.f32.mrb[1].mxu1 }
 0x239   : > { %v511_v60 = vadd.f32 %v508_v58, %v323_v47 }
 0x23b   : > { %512 = vadd.xlane.f32.xlu0 %v511_v60 }
 0x2c8   : > { %v513_v63 = vpop.xlane.xlu0 %512 }
 0x2c9   : > { %v514_v0 = vmul.f32 0.03125, %v513_v63 }
 0x2cb   : > { %v515_v1 = vsub.f32 %v511_v60, %v514_v0 }
 0x2cd   : > { %v519_v2 = vsel %vm518_vm1, %v515_v1, 0.0 }
 0x2ce   : > { %v520_v3 = vmul.f32 %v519_v2, %v519_v2 }
 0x2d0   : > { %521 = vadd.xlane.f32.xlu0 %v520_v3 }
 0x35d   : > { %v522_v4 = vpop.xlane.xlu0 %521 }
 0x35e   : > { %v523_v5 = vmul.f32 0.03125, %v522_v4 }
 0x360   : > { %v524_v6 = vadd.f32 1e-05, %v523_v5 }
 0x362   : > { %891 = vrsqrt.f32 %v524_v6 }
 0x36c   : > { %v892_v7 = vpop.eup %891 }
 0x36d   : > { %v526_v9 = vmul.f32 %v892_v7, %v519_v2 }
 0x36f   : > { %v534_v11 = vmul.f32 %v661_v8, %v526_v9 }
 0x371   : > { %v542_v12 = vadd.f32 %v662_v10, %v534_v11 }
 0x373   : > { %543 = vst [vmem:[%s322_s19] sm:$0xff] %v542_v12 }
 0x374   : > { %992 = shalt.err (!%p989_p2)
}
 0x375   : > { %s993_s12 = scalar_lea.hbm %s1320_s9, 128  ;;  %s997_s21 = scalar_lea.hbm %s1371_s7, 256 }
 0x376   : > { %p994_p13 = scmp.ne.s32.totalorder %s1320_s9, %s993_s12  ;;  %p998_p4 = scmp.lt.u32.totalorder %s1320_s9, %s1371_s7 }
 0x377   : > { %p999_p5 = scmp.lt.u32.totalorder %s997_s21, %s993_s12  ;;  %p1001_p11 = scmp.lt.u32.totalorder %s993_s12, %s1320_s9 }
 0x378   : > { %p995_p6 = pnand %p994_p13, %p1385_p0 }
 0x379   : > { %p1000_p8 = por %p999_p5, %p998_p4 }
 0x37a   : > { %p996_p10 = pneg %p995_p6 }
 0x37b   : > { %p1002_p1 = por %p1001_p11, %p1000_p8 }
 0x37d   : > { %p1003_p3 = pnand %p1002_p1, %p996_p10 }
 0x37f   : > { %1006 = shalt.err (!%p1003_p3)
}
 0x380   : > { %829 = dma.vmem_to_hbm [thread:$0]  (%p1385_p0), %s1322_s23, 128, %s1320_s9, %s545_s20  }
 0x381 PF: > { %s570_s29 = sand.u32 1, %s1037_s24   ;;  %p1386_p7 = scmp.ne.s32.totalorder %s1376_s8, 0 }
 0x382   : > { %p1387_p9 = scmp.ge.s32.totalorder %s1049_s27, 2  ;;  %s571_s30 = scalar_lea.sflag [#allocation4], %s570_s29 }
 0x384   : > { %p843_p12 = pnand %p1387_p9, %p1386_p7 }
 0x386   : > { %1032 = dma.done.wait (!%p843_p12), %s571_s30, 128  }
 0x387   : > { %1034 = vsyncadd (!%p843_p12), %s571_s30, 4294967168  ;;  %p21_p2 = scmp.ge.s32.totalorder %s1210_s13, 4   ;;  %s1388_s24 = smov %s1041_s25 }
 0x388   : > { %s1389_s25 = smov %s1045_s26  ;;  %s1390_s26 = smov %s1226_s17 }
 0x389   : > { %s1391_s27 = smov %s1210_s13  ;;  %23 = sbr.rel (!%p21_p2) target bundleno = 6 (0x6), region = 101 }
 0x390   :  { %576 = vsyncpa [#allocation3], 1 }
 0x391   :  { %578 = vsyncpa [#allocation3 + $0x1], 1 }
 0x392   :  { %579 = vsyncpa [#allocation6], 1 }
 0x393   :  { %580 = vsyncpa [#allocation4], 1 }
 0x394   :  { %582 = vsyncpa [#allocation4 + $0x1], 1 }

</bundles_post_ra>
